<compile_context>
chip_gen: v7x
topology: tpu7x:2x2x1
jax: 0.10.0
libtpu: 0.0.40
codegen_flags: <defaults>
</compile_context>

<pallas_src>
import jax
import jax.numpy as jnp
from jax.experimental import pallas as pl
from jax.experimental.pallas import tpu as pltpu


# Packed parameter layout in the SMEM scalar vector (25 f32 values):
#   w1[i, j] (2x3, in-major)  -> indices  0 + i*3 + j   (0..5)
#   b1[j]    (3,)             -> indices  6 + j          (6..8)
#   w2[i, j] (3x4, in-major)  -> indices  9 + i*4 + j   (9..20)
#   b2[j]    (4,)             -> indices 21 + j          (21..24)
_W1, _B1, _W2, _B2 = 0, 6, 9, 21


def mlp_kernel(p_ref, x_ref, o_ref):
    # p_ref: (25,) f32 in SMEM (scalar prefetch)
    # x_ref: (2, B_TILE) VMEM, batch on the lane axis
    # o_ref: (4, B_TILE) VMEM
    f32 = jnp.float32
    x0 = x_ref[0:1, :].astype(f32)   # (1, B_TILE) -- explicit f32 for v5e VPU
    x1 = x_ref[1:2, :].astype(f32)

    # fc1 + ReLU, fully unrolled VPU FMAs; bias initializes the accumulator.
    h = []
    for j in range(3):
        hj = p_ref[_B1 + j] + p_ref[_W1 + 0 * 3 + j] * x0 + p_ref[_W1 + 1 * 3 + j] * x1
        h.append(jnp.maximum(hj, 0.0))

    # fc2, fully unrolled; one lane-dense row store per output feature.
    for n in range(4):
        yn = (p_ref[_B2 + n]
              + p_ref[_W2 + 0 * 4 + n] * h[0]
              + p_ref[_W2 + 1 * 4 + n] * h[1]
              + p_ref[_W2 + 2 * 4 + n] * h[2])
        o_ref[n:n + 1, :] = yn.astype(o_ref.dtype)


def mini_zone_network(x, w1, b1, w2, b2, *, b_tile=8192):
    """x: (B, 2), w1: (2, 3), b1: (3,), w2: (3, 4), b2: (4,) -> (B, 4).

    Matches PyTorch: y = relu(x @ w1 + b1) @ w2 + b2   (w stored as (in, out)).
    """
    B = x.shape[0]

    # Layout plumbing in the wrapper: batch onto the lane axis, pad to tile multiple.
    xt = x.T                                        # (2, B)
    b128 = pl.cdiv(B, 128) * 128
    tile = min(b_tile, b128)                        # lane-dense tile, multiple of 128
    b_pad = pl.cdiv(B, tile) * tile
    if b_pad != B:
        xt = jnp.pad(xt, ((0, 0), (0, b_pad - B)))

    # Pack all 25 weights/biases into one scalar vector -> SMEM via scalar prefetch.
    params = jnp.concatenate(
        [w1.reshape(-1), b1.reshape(-1), w2.reshape(-1), b2.reshape(-1)]
    ).astype(jnp.float32)

    grid_spec = pltpu.PrefetchScalarGridSpec(
        num_scalar_prefetch=1,
        grid=(b_pad // tile,),
        in_specs=[pl.BlockSpec((2, tile), lambda i, p: (0, i))],
        out_specs=pl.BlockSpec((4, tile), lambda i, p: (0, i)),
    )

    out_t = pl.pallas_call(
        mlp_kernel,
        out_shape=jax.ShapeDtypeStruct((4, b_pad), x.dtype),
        grid_spec=grid_spec,
        compiler_params=pltpu.CompilerParams(
            dimension_semantics=("parallel",),
        ),
    )(params, xt)

    return out_t[:, :B].T                           # (B, 4)


def init_params():
    """Deterministic init mimicking nn.Linear's uniform(-1/sqrt(fan_in), 1/sqrt(fan_in))."""
    k = jax.random.PRNGKey(42)
    k1, k2, k3, k4 = jax.random.split(k, 4)
    bound1 = 1.0 / jnp.sqrt(2.0)   # fc1 fan_in = 2
    bound2 = 1.0 / jnp.sqrt(3.0)   # fc2 fan_in = 3
    # Stored as (in_features, out_features), i.e. W.T relative to PyTorch.
    w1 = jax.random.uniform(k1, (2, 3), jnp.float32, -bound1, bound1)
    b1 = jax.random.uniform(k2, (3,), jnp.float32, -bound1, bound1)
    w2 = jax.random.uniform(k3, (3, 4), jnp.float32, -bound2, bound2)
    b2 = jax.random.uniform(k4, (4,), jnp.float32, -bound2, bound2)
    return w1, b1, w2, b2


def reference_forward(x, w1, b1, w2, b2):
    h = jnp.maximum(x @ w1 + b1, 0.0)
    return h @ w2 + b2


if __name__ == "__main__":
    key = jax.random.PRNGKey(0)
    w1, b1, w2, b2 = init_params()

    # Small case consistent with the module spec (batch=8, in_features=2).
    x_small = jax.random.normal(key, (8, 2), dtype=jnp.float32)
    out_small = jax.block_until_ready(mini_zone_network(x_small, w1, b1, w2, b2))
    ref_small = reference_forward(x_small, w1, b1, w2, b2)
    assert out_small.shape == (8, 4), out_small.shape
    assert jnp.allclose(out_small, ref_small, atol=1e-5, rtol=1e-5), "small-batch mismatch"

    # Larger ragged batch: exercises the pipelined grid + padded last tile path.
    x_big = jax.random.normal(jax.random.PRNGKey(1), (4096 + 37, 2), dtype=jnp.float32)
    out_big = jax.block_until_ready(mini_zone_network(x_big, w1, b1, w2, b2, b_tile=2048))
    ref_big = reference_forward(x_big, w1, b1, w2, b2)
    assert out_big.shape == (4096 + 37, 4), out_big.shape
    assert jnp.allclose(out_big, ref_big, atol=1e-5, rtol=1e-5), "big-batch mismatch"

    print("KERNEL_OK")
</pallas_src>

<mosaic_0001>
module attributes {stable_mosaic.version = 11 : i64} {
  func.func @mlp_kernel(%arg0: i32, %arg1: memref<25xf32, #tpu.memory_space<smem>>, %arg2: memref<2x128xf32, #tpu.memory_space<vmem>>, %arg3: memref<4x128xf32, #tpu.memory_space<vmem>>) attributes {dimension_semantics = [#tpu.dimension_semantics<parallel>], iteration_bounds = array<i64: 1>, scalar_prefetch = 1 : i64, scratch_operands = 0 : i64, tpu.core_type = #tpu.core_type<tc>, window_params = [{transform_indices = @transform_0, window_bounds = array<i64: 2, 128>}, {transform_indices = @transform_1, window_bounds = array<i64: 4, 128>}]} {
    %c0 = arith.constant 0 : index
    %c0_0 = arith.constant 0 : index
    %0 = vector.load %arg2[%c0, %c0_0] : memref<2x128xf32, #tpu.memory_space<vmem>>, vector<1x128xf32>
    %c1 = arith.constant 1 : index
    %c0_1 = arith.constant 0 : index
    %1 = vector.load %arg2[%c1, %c0_1] : memref<2x128xf32, #tpu.memory_space<vmem>>, vector<1x128xf32>
    %c6 = arith.constant 6 : index
    %2 = memref.load %arg1[%c6] : memref<25xf32, #tpu.memory_space<smem>>
    %c0_2 = arith.constant 0 : index
    %3 = memref.load %arg1[%c0_2] : memref<25xf32, #tpu.memory_space<smem>>
    %4 = vector.broadcast %3 : f32 to vector<1x128xf32>
    %5 = arith.mulf %4, %0 : vector<1x128xf32>
    %6 = vector.broadcast %2 : f32 to vector<1x128xf32>
    %7 = arith.addf %6, %5 : vector<1x128xf32>
    %c3 = arith.constant 3 : index
    %8 = memref.load %arg1[%c3] : memref<25xf32, #tpu.memory_space<smem>>
    %9 = vector.broadcast %8 : f32 to vector<1x128xf32>
    %10 = arith.mulf %9, %1 : vector<1x128xf32>
    %11 = arith.addf %7, %10 : vector<1x128xf32>
    %cst = arith.constant 0.000000e+00 : f32
    %12 = vector.broadcast %cst : f32 to vector<1x128xf32>
    %13 = arith.maximumf %11, %12 : vector<1x128xf32>
    %c7 = arith.constant 7 : index
    %14 = memref.load %arg1[%c7] : memref<25xf32, #tpu.memory_space<smem>>
    %c1_3 = arith.constant 1 : index
    %15 = memref.load %arg1[%c1_3] : memref<25xf32, #tpu.memory_space<smem>>
    %16 = vector.broadcast %15 : f32 to vector<1x128xf32>
    %17 = arith.mulf %16, %0 : vector<1x128xf32>
    %18 = vector.broadcast %14 : f32 to vector<1x128xf32>
    %19 = arith.addf %18, %17 : vector<1x128xf32>
    %c4 = arith.constant 4 : index
    %20 = memref.load %arg1[%c4] : memref<25xf32, #tpu.memory_space<smem>>
    %21 = vector.broadcast %20 : f32 to vector<1x128xf32>
    %22 = arith.mulf %21, %1 : vector<1x128xf32>
    %23 = arith.addf %19, %22 : vector<1x128xf32>
    %cst_4 = arith.constant 0.000000e+00 : f32
    %24 = vector.broadcast %cst_4 : f32 to vector<1x128xf32>
    %25 = arith.maximumf %23, %24 : vector<1x128xf32>
    %c8 = arith.constant 8 : index
    %26 = memref.load %arg1[%c8] : memref<25xf32, #tpu.memory_space<smem>>
    %c2 = arith.constant 2 : index
    %27 = memref.load %arg1[%c2] : memref<25xf32, #tpu.memory_space<smem>>
    %28 = vector.broadcast %27 : f32 to vector<1x128xf32>
    %29 = arith.mulf %28, %0 : vector<1x128xf32>
    %30 = vector.broadcast %26 : f32 to vector<1x128xf32>
    %31 = arith.addf %30, %29 : vector<1x128xf32>
    %c5 = arith.constant 5 : index
    %32 = memref.load %arg1[%c5] : memref<25xf32, #tpu.memory_space<smem>>
    %33 = vector.broadcast %32 : f32 to vector<1x128xf32>
    %34 = arith.mulf %33, %1 : vector<1x128xf32>
    %35 = arith.addf %31, %34 : vector<1x128xf32>
    %cst_5 = arith.constant 0.000000e+00 : f32
    %36 = vector.broadcast %cst_5 : f32 to vector<1x128xf32>
    %37 = arith.maximumf %35, %36 : vector<1x128xf32>
    %c21 = arith.constant 21 : index
    %38 = memref.load %arg1[%c21] : memref<25xf32, #tpu.memory_space<smem>>
    %c9 = arith.constant 9 : index
    %39 = memref.load %arg1[%c9] : memref<25xf32, #tpu.memory_space<smem>>
    %40 = vector.broadcast %39 : f32 to vector<1x128xf32>
    %41 = arith.mulf %40, %13 : vector<1x128xf32>
    %42 = vector.broadcast %38 : f32 to vector<1x128xf32>
    %43 = arith.addf %42, %41 : vector<1x128xf32>
    %c13 = arith.constant 13 : index
    %44 = memref.load %arg1[%c13] : memref<25xf32, #tpu.memory_space<smem>>
    %45 = vector.broadcast %44 : f32 to vector<1x128xf32>
    %46 = arith.mulf %45, %25 : vector<1x128xf32>
    %47 = arith.addf %43, %46 : vector<1x128xf32>
    %c17 = arith.constant 17 : index
    %48 = memref.load %arg1[%c17] : memref<25xf32, #tpu.memory_space<smem>>
    %49 = vector.broadcast %48 : f32 to vector<1x128xf32>
    %50 = arith.mulf %49, %37 : vector<1x128xf32>
    %51 = arith.addf %47, %50 : vector<1x128xf32>
    %c0_6 = arith.constant 0 : index
    %c0_7 = arith.constant 0 : index
    %52 = vector.load %arg3[%c0_6, %c0_7] : memref<4x128xf32, #tpu.memory_space<vmem>>, vector<1x128xf32>
    tpu.vector_store %arg3[%c0_6, %c0_7], %51 {strides = array<i32>} : memref<4x128xf32, #tpu.memory_space<vmem>>, vector<1x128xf32>,
    %c22 = arith.constant 22 : index
    %53 = memref.load %arg1[%c22] : memref<25xf32, #tpu.memory_space<smem>>
    %c10 = arith.constant 10 : index
    %54 = memref.load %arg1[%c10] : memref<25xf32, #tpu.memory_space<smem>>
    %55 = vector.broadcast %54 : f32 to vector<1x128xf32>
    %56 = arith.mulf %55, %13 : vector<1x128xf32>
    %57 = vector.broadcast %53 : f32 to vector<1x128xf32>
    %58 = arith.addf %57, %56 : vector<1x128xf32>
    %c14 = arith.constant 14 : index
    %59 = memref.load %arg1[%c14] : memref<25xf32, #tpu.memory_space<smem>>
    %60 = vector.broadcast %59 : f32 to vector<1x128xf32>
    %61 = arith.mulf %60, %25 : vector<1x128xf32>
    %62 = arith.addf %58, %61 : vector<1x128xf32>
    %c18 = arith.constant 18 : index
    %63 = memref.load %arg1[%c18] : memref<25xf32, #tpu.memory_space<smem>>
    %64 = vector.broadcast %63 : f32 to vector<1x128xf32>
    %65 = arith.mulf %64, %37 : vector<1x128xf32>
    %66 = arith.addf %62, %65 : vector<1x128xf32>
    %c1_8 = arith.constant 1 : index
    %c0_9 = arith.constant 0 : index
    %67 = vector.load %arg3[%c1_8, %c0_9] : memref<4x128xf32, #tpu.memory_space<vmem>>, vector<1x128xf32>
    tpu.vector_store %arg3[%c1_8, %c0_9], %66 {strides = array<i32>} : memref<4x128xf32, #tpu.memory_space<vmem>>, vector<1x128xf32>,
    %c23 = arith.constant 23 : index
    %68 = memref.load %arg1[%c23] : memref<25xf32, #tpu.memory_space<smem>>
    %c11 = arith.constant 11 : index
    %69 = memref.load %arg1[%c11] : memref<25xf32, #tpu.memory_space<smem>>
    %70 = vector.broadcast %69 : f32 to vector<1x128xf32>
    %71 = arith.mulf %70, %13 : vector<1x128xf32>
    %72 = vector.broadcast %68 : f32 to vector<1x128xf32>
    %73 = arith.addf %72, %71 : vector<1x128xf32>
    %c15 = arith.constant 15 : index
    %74 = memref.load %arg1[%c15] : memref<25xf32, #tpu.memory_space<smem>>
    %75 = vector.broadcast %74 : f32 to vector<1x128xf32>
    %76 = arith.mulf %75, %25 : vector<1x128xf32>
    %77 = arith.addf %73, %76 : vector<1x128xf32>
    %c19 = arith.constant 19 : index
    %78 = memref.load %arg1[%c19] : memref<25xf32, #tpu.memory_space<smem>>
    %79 = vector.broadcast %78 : f32 to vector<1x128xf32>
    %80 = arith.mulf %79, %37 : vector<1x128xf32>
    %81 = arith.addf %77, %80 : vector<1x128xf32>
    %c2_10 = arith.constant 2 : index
    %c0_11 = arith.constant 0 : index
    %82 = vector.load %arg3[%c2_10, %c0_11] : memref<4x128xf32, #tpu.memory_space<vmem>>, vector<1x128xf32>
    tpu.vector_store %arg3[%c2_10, %c0_11], %81 {strides = array<i32>} : memref<4x128xf32, #tpu.memory_space<vmem>>, vector<1x128xf32>,
    %c24 = arith.constant 24 : index
    %83 = memref.load %arg1[%c24] : memref<25xf32, #tpu.memory_space<smem>>
    %c12 = arith.constant 12 : index
    %84 = memref.load %arg1[%c12] : memref<25xf32, #tpu.memory_space<smem>>
    %85 = vector.broadcast %84 : f32 to vector<1x128xf32>
    %86 = arith.mulf %85, %13 : vector<1x128xf32>
    %87 = vector.broadcast %83 : f32 to vector<1x128xf32>
    %88 = arith.addf %87, %86 : vector<1x128xf32>
    %c16 = arith.constant 16 : index
    %89 = memref.load %arg1[%c16] : memref<25xf32, #tpu.memory_space<smem>>
    %90 = vector.broadcast %89 : f32 to vector<1x128xf32>
    %91 = arith.mulf %90, %25 : vector<1x128xf32>
    %92 = arith.addf %88, %91 : vector<1x128xf32>
    %c20 = arith.constant 20 : index
    %93 = memref.load %arg1[%c20] : memref<25xf32, #tpu.memory_space<smem>>
    %94 = vector.broadcast %93 : f32 to vector<1x128xf32>
    %95 = arith.mulf %94, %37 : vector<1x128xf32>
    %96 = arith.addf %92, %95 : vector<1x128xf32>
    %c3_12 = arith.constant 3 : index
    %c0_13 = arith.constant 0 : index
    %97 = vector.load %arg3[%c3_12, %c0_13] : memref<4x128xf32, #tpu.memory_space<vmem>>, vector<1x128xf32>
    tpu.vector_store %arg3[%c3_12, %c0_13], %96 {strides = array<i32>} : memref<4x128xf32, #tpu.memory_space<vmem>>, vector<1x128xf32>,
    return
  }
  func.func @transform_0(%arg0: i32, %arg1: memref<25xf32, #tpu.memory_space<smem>>) -> (i32, i32) {
    %c0_i32 = arith.constant 0 : i32
    %c0_i32_0 = arith.constant 0 : i32
    return %c0_i32, %arg0 : i32, i32
  }
  func.func @transform_1(%arg0: i32, %arg1: memref<25xf32, #tpu.memory_space<smem>>) -> (i32, i32) {
    %c0_i32 = arith.constant 0 : i32
    %c0_i32_0 = arith.constant 0 : i32
    return %c0_i32, %arg0 : i32, i32
  }
}

</mosaic_0001>

<bundles_post_ra>
// kernel: tpu_custom_call.1
= control target key start
LH: loop header
LB: loop body
LE: loop exit
PB: predicated region body
PF: predicated region fallthrough
CT: control target
= control target key end

     0   :  { %s289_s0 = inlined_call_operand.hbm [shape: f32[25], index: 0, kind: input, shape index: {}]   ;;  %s290_s1 = inlined_call_operand.vmem [shape: f32[2,128], index: 1, kind: input, shape index: {}]   ;;  %s291_s2 = inlined_call_operand.hbm [shape: f32[4,128], index: 2, kind: output, shape index: {}]  }
   0x1   :  { %s149_s11 = scalar_lea.hbm %s289_s0, 16 }
   0x2   :  { %p150_p0 = scmp.ne.s32.totalorder %s289_s0, %s149_s11  ;;  %p153_p1 = scmp.lt.u32.totalorder %s149_s11, %s289_s0 }
   0x4   :  { %p155_p2 = pnand %p153_p1, %p150_p0 }
   0x6   :  { %158 = shalt.err (!%p155_p2)  }
   0x7   :  { %s185_s16 = smov [#allocation3]  }
   0x8   :  { %8 = dma.hbm_to_smem %s289_s0, 16, %s185_s16, [#allocation2] }
   0x9   :  { %181 = dma.done.wait [#allocation2], 16 }
   0xa   :  { %182 = vsyncadd [#allocation2], 4294967280 }
   0xb   :  { %10 = sfence }
   0xc   :  { %s214_s19 = sld [smem:[#allocation3 + $0x6]]  ;;  %s17_s20 = sld [smem:[#allocation3]] }
   0xd   :  { %s124_s21 = sld [smem:[#allocation3 + $0x3]] }
   0xe   :  { %11 = vsyncpa [#allocation5], 0  ;;  %s216_s22 = sld [smem:[#allocation3 + $0x7]]  ;;  %s126_s23 = sld [smem:[#allocation3 + $0x1]]  ;;  %v14_v0 = vld [vmem:[%s290_s1] sm:$0x1] }
   0xf   :  { %s127_s24 = sld [smem:[#allocation3 + $0x4]]  ;;  %s218_s25 = sld [smem:[#allocation3 + $0x8]]  ;;  %v15_v1 = vld [vmem:[%s290_s1 + $0x1] sm:$0x1] }
  0x10   :  { %s129_s0 = sld [smem:[#allocation3 + $0x2]]  ;;  %s130_s28 = sld [smem:[#allocation3 + $0x5]] }
  0x11   :  { %s226_s3 = sld [smem:[#allocation3 + $0x15]]  ;;  %s228_s4 = sld [smem:[#allocation3 + $0x9]] }
  0x12   :  { %s230_s5 = sld [smem:[#allocation3 + $0xd]]  ;;  %s232_s6 = sld [smem:[#allocation3 + $0x11]]  ;;  %v18_v2 = vstv %s17_s20  ;;  %v20_v3 = vstv %s214_s19 }
  0x13   :  { %v23_v4 = vstv %s124_s21  ;;  %s235_s7 = sld [smem:[#allocation3 + $0x16]]  ;;  %s237_s8 = sld [smem:[#allocation3 + $0xa]]  ;;  %v19_v5 = vmul.f32 %v18_v2, %v14_v0 }
  0x14   :  { %v24_v6 = vmul.f32 %v23_v4, %v15_v1  ;;  %v29_v7 = vstv %s126_s23  ;;  %v31_v8 = vstv %s216_s22  ;;  %s240_s1 = sld [smem:[#allocation3 + $0xe]]  ;;  %s242_s9 = sld [smem:[#allocation3 + $0x12]] }
  0x15   :  { %v30_v9 = vmul.f32 %v29_v7, %v14_v0  ;;  %v34_v10 = vstv %s127_s24  ;;  %v42_v11 = vstv %s218_s25  ;;  %s245_s10 = sld [smem:[#allocation3 + $0x17]]  ;;  %s247_s11 = sld [smem:[#allocation3 + $0xb]]  ;;  %v21_v12 = vadd.f32 %v20_v3, %v19_v5 }
  0x16   :  { %v35_v13 = vmul.f32 %v34_v10, %v15_v1  ;;  %v40_v14 = vstv %s129_s0  ;;  %v45_v15 = vstv %s130_s28  ;;  %s249_s12 = sld [smem:[#allocation3 + $0xf]]  ;;  %s251_s13 = sld [smem:[#allocation3 + $0x13]] }
  0x17   :  { %v32_v16 = vadd.f32 %v31_v8, %v30_v9  ;;  %v41_v17 = vmul.f32 %v40_v14, %v14_v0  ;;  %v46_v18 = vmul.f32 %v45_v15, %v15_v1  ;;  %s253_s14 = sld [smem:[#allocation3 + $0xc]]  ;;  %v25_v19 = vadd.f32 %v24_v6, %v21_v12  ;;  %s258_s15 = sld [smem:[#allocation3 + $0x18]] }
  0x18   :  { %v51_v20 = vstv %s228_s4  ;;  %v53_v21 = vstv %s226_s3  ;;  %v56_v22 = vstv %s230_s5  ;;  %v60_v25 = vstv %s232_s6  ;;  %s262_s16 = sld [smem:[#allocation3 + $0x10]]  ;;  %s264_s17 = sld [smem:[#allocation3 + $0x14]] }
  0x19   :  { %v36_v23 = vadd.f32 %v35_v13, %v32_v16  ;;  %v43_v24 = vadd.f32 %v42_v11, %v41_v17  ;;  %v66_v26 = vstv %s237_s8  ;;  %v26_v27 = vmax.f32 %v25_v19, 0.0  ;;  %s186_s18 = smov [#allocation4]  }
  0x1a   :  { %v68_v28 = vstv %s235_s7  ;;  %v71_v29 = vstv %s240_s1  ;;  %v75_v30 = vstv %s242_s9  ;;  %s115_s19 = sshll.u32 %s186_s18, 4  ;;  %s116_s19 = int_to_ptr.vmem [resolvable:$true] %s115_s19 }
  0x1b   :  { %v37_v31 = vmax.f32 %v36_v23, 0.0  ;;  %v47_v32 = vadd.f32 %v46_v18, %v43_v24  ;;  %v81_v33 = vstv %s247_s11  ;;  %v83_v34 = vstv %s245_s10  ;;  %s159_s20 = scalar_lea.vmem %s116_s19, 64  ;;  %p164_p4 = scmp.lt.s32.totalorder %s116_s19, %s116_s19 }
  0x1c   :  { %v52_v35 = vmul.f32 %v51_v20, %v26_v27  ;;  %v67_v36 = vmul.f32 %v66_v26, %v26_v27  ;;  %v82_v37 = vmul.f32 %v81_v33, %v26_v27  ;;  %v86_v38 = vstv %s249_s12  ;;  %p160_p3 = scmp.ne.s32.totalorder %s116_s19, %s159_s20  ;;  %p165_p5 = scmp.lt.s32.totalorder %s159_s20, %s159_s20 }
  0x1d   :  { %v48_v39 = vmax.f32 %v47_v32, 0.0  ;;  %v57_v40 = vmul.f32 %v56_v22, %v37_v31  ;;  %v72_v41 = vmul.f32 %v71_v29, %v37_v31  ;;  %v87_v42 = vmul.f32 %v86_v38, %v37_v31 }
  0x1e   :  { %v54_v43 = vadd.f32 %v53_v21, %v52_v35  ;;  %v69_v44 = vadd.f32 %v68_v28, %v67_v36  ;;  %v84_v45 = vadd.f32 %v83_v34, %v82_v37  ;;  %v90_v46 = vstv %s251_s13  ;;  %p166_p6 = por %p165_p5, %p164_p4 }
  0x1f   :  { %v61_v47 = vmul.f32 %v60_v25, %v48_v39  ;;  %v76_v48 = vmul.f32 %v75_v30, %v48_v39  ;;  %v91_v49 = vmul.f32 %v90_v46, %v48_v39  ;;  %v96_v50 = vstv %s253_s14 }
  0x20   :  { %v58_v51 = vadd.f32 %v57_v40, %v54_v43  ;;  %v73_v52 = vadd.f32 %v72_v41, %v69_v44  ;;  %v88_v53 = vadd.f32 %v87_v42, %v84_v45  ;;  %v97_v54 = vmul.f32 %v96_v50, %v26_v27  ;;  %p167_p7 = pnand %p166_p6, %p160_p3 }
  0x21   :  { %v98_v55 = vstv %s258_s15  ;;  %v101_v56 = vstv %s262_s16  ;;  %v105_v57 = vstv %s264_s17 }
  0x22   :  { %v62_v58 = vadd.f32 %v61_v47, %v58_v51  ;;  %v77_v59 = vadd.f32 %v76_v48, %v73_v52  ;;  %v92_v60 = vadd.f32 %v91_v49, %v88_v53  ;;  %v99_v61 = vadd.f32 %v98_v55, %v97_v54 }
  0x23   :  { %v102_v62 = vmul.f32 %v101_v56, %v37_v31  ;;  %v106_v63 = vmul.f32 %v105_v57, %v48_v39 }
  0x24   :  { %63 = vst [vmem:[#allocation4] sm:$0x1] %v62_v58  ;;  %78 = vst [vmem:[#allocation4 + $0x1] sm:$0x1] %v77_v59 }
  0x25   :  { %93 = vst [vmem:[#allocation4 + $0x2] sm:$0x1] %v92_v60  ;;  %v103_v0 = vadd.f32 %v102_v62, %v99_v61 }
  0x27   :  { %v107_v1 = vadd.f32 %v106_v63, %v103_v0 }
  0x29   :  { %108 = vst [vmem:[#allocation4 + $0x3] sm:$0x1] %v107_v1 }
  0x2a   :  { %170 = shalt.err (!%p167_p7)
}
  0x2b   :  { %s171_s23 = scalar_lea.hbm %s291_s2, 64 }
  0x2c   :  { %p172_p8 = scmp.ne.s32.totalorder %s291_s2, %s171_s23  ;;  %p175_p9 = scmp.lt.u32.totalorder %s171_s23, %s291_s2 }
  0x2e   :  { %p177_p10 = pnand %p175_p9, %p172_p8 }
  0x30   :  { %180 = shalt.err (!%p177_p10)
}
  0x31   :  { %118 = dma.vmem_to_hbm [thread:$0]  %s116_s19, 64, %s291_s2, [#allocation5]  }
  0x32   :  { %183 = dma.done.wait [#allocation5], 64  }
  0x33   :  { %184 = vsyncadd [#allocation5], 4294967232 }
  0x34   :  { %122 = vsyncpa [#allocation5], 1 }

</bundles_post_ra>
